<compile_context>
chip_gen: v7x
topology: tpu7x:2x2x1
jax: 0.10.0
libtpu: 0.0.40
codegen_flags: <defaults>
</compile_context>

<pallas_src>
import math

import jax
import jax.numpy as jnp
from jax import lax
from jax.experimental import pallas as pl
from jax.experimental.pallas import tpu as pltpu


def _round_up(x, m):
    return ((x + m - 1) // m) * m


def _pad_to(x, target_shape):
    pads = [(0, t - s) for s, t in zip(x.shape, target_shape)]
    return jnp.pad(x, pads)


def _seq2seq_kernel(
    # per-block scalars (VMEM, int32, shape (Bblk,1,1))
    len_ref, nvoc_ref,
    # array inputs (VMEM)
    src_ref, w_enc_ref, b_enc_ref,
    tgt_ref, w_q_ref, w_c_ref, w_q2_ref, b_o_ref,
    voc_ref, w_v_ref,
    # outputs
    mem_out_ref, enc_out_ref, dec_out_ref, attn_out_ref, vscore_out_ref,
    # scratch (persists across the V axis)
    dec_bf_ref,
):
    v_idx = pl.program_id(1)

    # ---- encoder + decoder + attention: once per batch block (v == 0) ------
    @pl.when(v_idx == 0)
    def _():
        Bblk, Sp, F = src_ref.shape
        Tp, Fd = tgt_ref.shape[1], tgt_ref.shape[2]
        Hp = w_enc_ref.shape[1]
        lens = len_ref[...]                                   # (Bblk,1,1) i32

        # encoder: memory_banks = tanh(src @ W_enc + b), flattened M = Bblk*Sp
        src2 = src_ref[...].reshape(Bblk * Sp, F)
        mem2 = jnp.tanh(
            jnp.dot(src2, w_enc_ref[...], preferred_element_type=jnp.float32)
            + b_enc_ref[...])
        mem_bf = mem2.astype(jnp.bfloat16).reshape(Bblk, Sp, Hp)
        mem_out_ref[...] = mem_bf                             # bf16 store

        # masked mean over valid src timesteps -> decoder init state (f32 acc)
        s_iota_col = lax.broadcasted_iota(jnp.int32, (1, Sp, 1), 1)
        valid_bf = (s_iota_col < lens).astype(jnp.bfloat16)   # (Bblk,Sp,1)
        denom = jnp.maximum(lens, 1).astype(jnp.float32)      # (Bblk,1,1)
        enc_state = jnp.einsum('bsh,bsx->bxh', mem_bf, valid_bf,
                               preferred_element_type=jnp.float32) / denom
        enc_out_ref[...] = enc_state                          # (Bblk,1,Hp) f32

        # decoder query (flattened M = Bblk*Tp) + dot-product attention
        tgt2 = tgt_ref[...].reshape(Bblk * Tp, Fd)
        q2 = jnp.dot(tgt2, w_q_ref[...], preferred_element_type=jnp.float32)
        q_bf2 = q2.astype(jnp.bfloat16)
        q_bf = q_bf2.reshape(Bblk, Tp, Hp)

        scores = jnp.einsum('bth,bsh->bts', q_bf, mem_bf,
                            preferred_element_type=jnp.float32)
        s_iota_lane = lax.broadcasted_iota(jnp.int32, (1, 1, Sp), 2)
        smask = s_iota_lane < lens                            # (Bblk,1,Sp)
        scores = jnp.where(smask, scores, -1e30)
        scores = scores - jnp.max(scores, axis=-1, keepdims=True)
        e = jnp.exp(scores)
        attn = e * pl.reciprocal(jnp.sum(e, axis=-1, keepdims=True),
                                 approx=True)
        attn_out_ref[...] = attn.astype(jnp.bfloat16)         # bf16 store

        ctx = jnp.einsum('bts,bsh->bth', attn.astype(jnp.bfloat16), mem_bf,
                         preferred_element_type=jnp.float32)
        ctx2 = ctx.reshape(Bblk * Tp, Hp).astype(jnp.bfloat16)
        dec_pre = (jnp.dot(ctx2, w_c_ref[...],
                           preferred_element_type=jnp.float32)
                   + jnp.dot(q_bf2, w_q2_ref[...],
                             preferred_element_type=jnp.float32)
                   + b_o_ref[...]).reshape(Bblk, Tp, Hp)
        dec = jnp.tanh(dec_pre + enc_state)
        dec_out_ref[...] = dec                                # f32 store
        dec_bf_ref[...] = dec.astype(jnp.bfloat16)            # persists over V

    # ---- vocab scoring for this V tile (runs at every grid step) ------------
    Bblk, TV, Fvt = voc_ref.shape
    Hp = w_v_ref.shape[1]
    voc2 = voc_ref[...].reshape(Bblk * TV, Fvt)               # fused emb+type
    vemb_bf = jnp.dot(voc2, w_v_ref[...],
                      preferred_element_type=jnp.float32
                      ).astype(jnp.bfloat16).reshape(Bblk, TV, Hp)
    vscore = jnp.einsum('bth,bvh->btv', dec_bf_ref[...], vemb_bf,
                        preferred_element_type=jnp.float32)   # (Bblk,Tp,TV)
    nvoc = nvoc_ref[...]                                      # (Bblk,1,1)
    v_iota = lax.broadcasted_iota(jnp.int32, (1, 1, TV), 2) + v_idx * TV
    vscore_out_ref[...] = jnp.where(v_iota < nvoc, vscore, -1e30
                                    ).astype(jnp.bfloat16)    # bf16 store


@jax.jit
def seq2seq_forward(params, src, lengths, tgt_emb, vocab_emb, vocab_type,
                    vocab_size):
    """Teacher-forced forward pass.

    src       : [S, B, F]       float32
    lengths   : [B]             int32
    tgt_emb   : [B, Tn, Tl, Fd] float32
    vocab_emb : [B, V, Fv]      float32
    vocab_type: [B, V]          int32
    vocab_size: [B]             int32
    """
    S, B, F = src.shape
    _, Tn, Tl, Fd = tgt_emb.shape
    T = Tn * Tl
    V, Fv = vocab_emb.shape[1], vocab_emb.shape[2]
    H = params["w_enc"].shape[1]
    Ts = params["type_table"].shape[1]
    Fvt = Fv + Ts

    # ---- glue in plain JAX: layout transposes + type embedding lookup -------
    src_bm = jnp.transpose(src, (1, 0, 2))                 # [B, S, F]
    tgt_flat = tgt_emb.reshape(B, T, Fd)                   # [B, T, Fd]
    type_emb = params["type_table"][vocab_type]            # [B, V, Ts]
    pos = jnp.arange(V)[None, :, None]
    type_emb = jnp.where(pos < vocab_size[:, None, None], type_emb, 0.0)
    voc_full = jnp.concatenate([vocab_emb, type_emb], axis=-1)  # [B, V, Fvt]

    # ---- padded (lane-dense) sizes ------------------------------------------
    Hp = _round_up(H, 128)
    Sp = _round_up(S, 128)
    Tp = _round_up(T, 16)
    TV = min(512, _round_up(V, 128))        # vocab tile per inner grid step
    Vp = _round_up(V, TV)

    Bblk = min(8, B)
    # keep >= 2 batch grid steps when possible (megacore / v7x 2-TC sharding)
    while Bblk > 1 and -(-B // Bblk) < 2:
        Bblk = max(1, Bblk // 2)
    Bp = _round_up(B, Bblk)

    bf16 = jnp.bfloat16
    src_p = _pad_to(src_bm.astype(bf16), (Bp, Sp, F))
    tgt_p = _pad_to(tgt_flat.astype(bf16), (Bp, Tp, Fd))
    voc_p = _pad_to(voc_full.astype(bf16), (Bp, Vp, Fvt))
    len_p = _pad_to(lengths.astype(jnp.int32).reshape(B, 1, 1), (Bp, 1, 1))
    nvoc_p = _pad_to(vocab_size.astype(jnp.int32).reshape(B, 1, 1), (Bp, 1, 1))

    # zero-padded weights along H (semantically neutral)
    w_enc = _pad_to(params["w_enc"].astype(bf16), (F, Hp))
    b_enc = _pad_to(params["b_enc"].astype(jnp.float32), (1, Hp))
    w_q = _pad_to(params["w_q"].astype(bf16), (Fd, Hp))
    w_c = _pad_to(params["w_c"].astype(bf16), (Hp, Hp))
    w_q2 = _pad_to(params["w_q2"].astype(bf16), (Hp, Hp))
    b_o = _pad_to(params["b_o"].astype(jnp.float32), (1, Hp))
    w_v = _pad_to(params["w_v"].astype(bf16), (Fvt, Hp))

    # ---- BlockSpecs ----------------------------------------------------------
    def batch3(shape):
        return pl.BlockSpec(shape, lambda g, v: (g, 0, 0))

    def const2(shape):
        idx = lambda g, v: (0, 0)
        try:
            # constant index_map -> single buffer, no wasted double buffer
            return pl.BlockSpec(shape, idx, pipeline_mode=pl.Buffered(1))
        except (TypeError, AttributeError):
            return pl.BlockSpec(shape, idx)

    in_specs = [
        batch3((Bblk, 1, 1)),            # lengths
        batch3((Bblk, 1, 1)),            # vocab_size
        batch3((Bblk, Sp, F)),           # src
        const2((F, Hp)),                 # w_enc
        const2((1, Hp)),                 # b_enc
        batch3((Bblk, Tp, Fd)),          # tgt_emb
        const2((Fd, Hp)),                # w_q
        const2((Hp, Hp)),                # w_c
        const2((Hp, Hp)),                # w_q2
        const2((1, Hp)),                 # b_o
        pl.BlockSpec((Bblk, TV, Fvt), lambda g, v: (g, v, 0)),  # vocab(+type)
        const2((Fvt, Hp)),               # w_v (fused emb+type projection)
    ]
    out_specs = (
        batch3((Bblk, Sp, Hp)),          # memory_banks (bf16)
        batch3((Bblk, 1, Hp)),           # enc_state (f32)
        batch3((Bblk, Tp, Hp)),          # dec_out (f32)
        batch3((Bblk, Tp, Sp)),          # attn (bf16)
        pl.BlockSpec((Bblk, Tp, TV), lambda g, v: (g, 0, v)),   # vscore (bf16)
    )
    out_shape = (
        jax.ShapeDtypeStruct((Bp, Sp, Hp), bf16),
        jax.ShapeDtypeStruct((Bp, 1, Hp), jnp.float32),
        jax.ShapeDtypeStruct((Bp, Tp, Hp), jnp.float32),
        jax.ShapeDtypeStruct((Bp, Tp, Sp), bf16),
        jax.ShapeDtypeStruct((Bp, Tp, Vp), bf16),
    )

    # ---- generation-aware VMEM budget ----------------------------------------
    def nbytes(shape, dt):
        return math.prod(shape) * jnp.dtype(dt).itemsize

    weight_bytes = (nbytes((F, Hp), bf16) + nbytes((Fd, Hp), bf16)
                    + 2 * nbytes((Hp, Hp), bf16) + nbytes((Fvt, Hp), bf16)
                    + 2 * nbytes((1, Hp), jnp.float32))
    stream_bytes = 2 * (2 * nbytes((Bblk, 1, 1), jnp.int32)
                        + nbytes((Bblk, Sp, F), bf16)
                        + nbytes((Bblk, Tp, Fd), bf16)
                        + nbytes((Bblk, TV, Fvt), bf16))
    out_bytes = 2 * (nbytes((Bblk, Sp, Hp), bf16)
                     + nbytes((Bblk, 1, Hp), jnp.float32)
                     + nbytes((Bblk, Tp, Hp), jnp.float32)
                     + nbytes((Bblk, Tp, Sp), bf16)
                     + nbytes((Bblk, Tp, TV), bf16))
    scratch_bytes = nbytes((Bblk, Tp, Hp), bf16)
    block_bytes = weight_bytes + stream_bytes + out_bytes + scratch_bytes

    try:
        vmem_cap = int(getattr(pltpu.get_tpu_info(), "vmem_capacity_bytes",
                               64 * 2**20))
    except Exception:
        vmem_cap = 64 * 2**20
    vmem_limit = max(32 * 2**20, int(1.5 * block_bytes))
    vmem_limit = int(min(vmem_limit, int(0.85 * vmem_cap)))

    outs = pl.pallas_call(
        _seq2seq_kernel,
        grid=(Bp // Bblk, Vp // TV),
        in_specs=in_specs,
        out_specs=out_specs,
        out_shape=out_shape,
        scratch_shapes=[pltpu.VMEM((Bblk, Tp, Hp), bf16)],
        compiler_params=pltpu.CompilerParams(
            dimension_semantics=("parallel", "arbitrary"),
            vmem_limit_bytes=vmem_limit),
    )(len_p, nvoc_p, src_p, w_enc, b_enc, tgt_p, w_q, w_c, w_q2, b_o,
      voc_p, w_v)

    mem_p, enc_p, dec_p, attn_p, vsc_p = outs

    # strip padding back to original shapes (slice BEFORE any downstream
    # reductions; padded rows contain garbage by construction)
    memory_banks = mem_p[:B, :S, :H]       # bf16
    enc_state = enc_p[:B, :, :H]           # f32
    dec_out = dec_p[:B, :T, :H]            # f32
    attn = attn_p[:B, :T, :S]              # bf16
    vscores = vsc_p[:B, :T, :V]            # bf16 (upcast for log-softmax/loss)

    # onmt conventions: dec output [tgt_len x batch x hidden],
    #                   attn       [tgt_len x batch x src_len]
    dec_out_tbh = jnp.transpose(dec_out, (1, 0, 2))
    attn_tbs = jnp.transpose(attn, (1, 0, 2))
    return dec_out_tbh, {"std": attn_tbs}, memory_banks, enc_state, vscores


def init_params(key, F, H, Fd, Fv, type_size, n_types):
    ks = jax.random.split(key, 8)
    scale = 0.1
    Dv = Fv + type_size
    return {
        "w_enc": scale * jax.random.normal(ks[0], (F, H), jnp.float32),
        "b_enc": scale * jax.random.normal(ks[1], (1, H), jnp.float32),
        "w_q":   scale * jax.random.normal(ks[2], (Fd, H), jnp.float32),
        "w_c":   scale * jax.random.normal(ks[3], (H, H), jnp.float32),
        "w_q2":  scale * jax.random.normal(ks[4], (H, H), jnp.float32),
        "b_o":   scale * jax.random.normal(ks[5], (1, H), jnp.float32),
        "w_v":   scale * jax.random.normal(ks[6], (Dv, H), jnp.float32),
        "type_table": scale * jax.random.normal(
            ks[7], (n_types, type_size), jnp.float32),
    }


if __name__ == "__main__":
    # small deterministic shapes
    B, S, F = 2, 16, 32        # batch, src_len, src features
    Tn, Tl, Fd = 2, 4, 32      # tgt_s_num, tgt_s_len, tgt feat -> T = 8
    V, Fv = 8, 32              # max vocab candidates, vocab emb dim
    H = 32                     # hidden
    type_size, n_types = 16, 4

    key = jax.random.PRNGKey(0)
    k_p, k_src, k_tgt, k_voc, k_typ = jax.random.split(key, 5)

    params = init_params(k_p, F, H, Fd, Fv, type_size, n_types)

    src = jax.random.normal(k_src, (S, B, F), jnp.float32)
    lengths = jnp.array([16, 11], dtype=jnp.int32)
    tgt_emb = jax.random.normal(k_tgt, (B, Tn, Tl, Fd), jnp.float32)
    vocab_emb = jax.random.normal(k_voc, (B, V, Fv), jnp.float32)
    vocab_type = jax.random.randint(k_typ, (B, V), 0, n_types, jnp.int32)
    vocab_size = jnp.array([8, 5], dtype=jnp.int32)

    dec_out, attns, memory_banks, enc_state, vscores = seq2seq_forward(
        params, src, lengths, tgt_emb, vocab_emb, vocab_type, vocab_size)

    jax.block_until_ready((dec_out, attns["std"], memory_banks, enc_state,
                           vscores))

    assert dec_out.shape == (Tn * Tl, B, H)
    assert attns["std"].shape == (Tn * Tl, B, S)
    assert memory_banks.shape == (B, S, H)
    assert enc_state.shape == (B, 1, H)
    assert vscores.shape == (B, Tn * Tl, V)
    print("KERNEL_OK")
</pallas_src>

<mosaic_0001>
module attributes {stable_mosaic.version = 11 : i64} {
  func.func @_seq2seq_kernel(%arg0: i32, %arg1: i32, %arg2: memref<1x1x1xi32, #tpu.memory_space<vmem>>, %arg3: memref<1x1x1xi32, #tpu.memory_space<vmem>>, %arg4: memref<1x128x32xbf16, #tpu.memory_space<vmem>>, %arg5: memref<32x128xbf16, #tpu.memory_space<vmem>>, %arg6: memref<1x128xf32, #tpu.memory_space<vmem>>, %arg7: memref<1x16x32xbf16, #tpu.memory_space<vmem>>, %arg8: memref<32x128xbf16, #tpu.memory_space<vmem>>, %arg9: memref<128x128xbf16, #tpu.memory_space<vmem>>, %arg10: memref<128x128xbf16, #tpu.memory_space<vmem>>, %arg11: memref<1x128xf32, #tpu.memory_space<vmem>>, %arg12: memref<1x128x48xbf16, #tpu.memory_space<vmem>>, %arg13: memref<48x128xbf16, #tpu.memory_space<vmem>>, %arg14: memref<1x128x128xbf16, #tpu.memory_space<vmem>>, %arg15: memref<1x1x128xf32, #tpu.memory_space<vmem>>, %arg16: memref<1x16x128xf32, #tpu.memory_space<vmem>>, %arg17: memref<1x16x128xbf16, #tpu.memory_space<vmem>>, %arg18: memref<1x16x128xbf16, #tpu.memory_space<vmem>>, %arg19: memref<1x16x128xbf16, #tpu.memory_space<vmem>>) attributes {dimension_semantics = [#tpu.dimension_semantics<parallel>, #tpu.dimension_semantics<arbitrary>], iteration_bounds = array<i64: 2, 1>, scalar_prefetch = 0 : i64, scratch_operands = 1 : i64, tpu.core_type = #tpu.core_type<tc>, window_params = [{transform_indices = @transform_0, window_bounds = array<i64: 1, 1, 1>}, {transform_indices = @transform_1, window_bounds = array<i64: 1, 1, 1>}, {transform_indices = @transform_2, window_bounds = array<i64: 1, 128, 32>}, {pipeline_mode = #tpu.pipeline_mode<synchronous>, transform_indices = @transform_3, window_bounds = array<i64: 32, 128>}, {pipeline_mode = #tpu.pipeline_mode<synchronous>, transform_indices = @transform_4, window_bounds = array<i64: 1, 128>}, {transform_indices = @transform_5, window_bounds = array<i64: 1, 16, 32>}, {pipeline_mode = #tpu.pipeline_mode<synchronous>, transform_indices = @transform_6, window_bounds = array<i64: 32, 128>}, {pipeline_mode = #tpu.pipeline_mode<synchronous>, transform_indices = @transform_7, window_bounds = array<i64: 128, 128>}, {pipeline_mode = #tpu.pipeline_mode<synchronous>, transform_indices = @transform_8, window_bounds = array<i64: 128, 128>}, {pipeline_mode = #tpu.pipeline_mode<synchronous>, transform_indices = @transform_9, window_bounds = array<i64: 1, 128>}, {transform_indices = @transform_10, window_bounds = array<i64: 1, 128, 48>}, {pipeline_mode = #tpu.pipeline_mode<synchronous>, transform_indices = @transform_11, window_bounds = array<i64: 48, 128>}, {transform_indices = @transform_12, window_bounds = array<i64: 1, 128, 128>}, {transform_indices = @transform_13, window_bounds = array<i64: 1, 1, 128>}, {transform_indices = @transform_14, window_bounds = array<i64: 1, 16, 128>}, {transform_indices = @transform_15, window_bounds = array<i64: 1, 16, 128>}, {transform_indices = @transform_16, window_bounds = array<i64: 1, 16, 128>}]} {
    %c0_i32 = arith.constant 0 : i32
    %0 = arith.cmpi eq, %arg1, %c0_i32 : i32
    %1 = arith.extui %0 : i1 to i32
    %c0_i32_0 = arith.constant 0 : i32
    %2 = arith.cmpi ne, %1, %c0_i32_0 : i32
    scf.if %2 {
      %c0_16 = arith.constant 0 : index
      %c0_17 = arith.constant 0 : index
      %c0_18 = arith.constant 0 : index
      %24 = vector.load %arg2[%c0_16, %c0_17, %c0_18] : memref<1x1x1xi32, #tpu.memory_space<vmem>>, vector<1x1x1xi32>
      %c0_19 = arith.constant 0 : index
      %c0_20 = arith.constant 0 : index
      %c0_21 = arith.constant 0 : index
      %25 = vector.load %arg4[%c0_19, %c0_20, %c0_21] : memref<1x128x32xbf16, #tpu.memory_space<vmem>>, vector<1x128x32xbf16>
      %26 = vector.shape_cast %25 : vector<1x128x32xbf16> to vector<128x32xbf16>
      %c0_22 = arith.constant 0 : index
      %c0_23 = arith.constant 0 : index
      %27 = vector.load %arg5[%c0_22, %c0_23] : memref<32x128xbf16, #tpu.memory_space<vmem>>, vector<32x128xbf16>
      %cst_24 = arith.constant dense<0.000000e+00> : vector<128x128xf32>
      %28 = tpu.matmul %26, %27, %cst_24 {dimension_numbers = #tpu.dot_dimension_numbers<[1], [0], [0], [1], [0, 0, 1, 1], [], []>} : vector<128x32xbf16>, vector<32x128xbf16>, vector<128x128xf32> -> vector<128x128xf32>
      %c0_25 = arith.constant 0 : index
      %c0_26 = arith.constant 0 : index
      %29 = vector.load %arg6[%c0_25, %c0_26] : memref<1x128xf32, #tpu.memory_space<vmem>>, vector<1x128xf32>
      %30 = vector.broadcast %29 : vector<1x128xf32> to vector<128x128xf32>
      %31 = arith.addf %28, %30 : vector<128x128xf32>
      %32 = math.tanh %31 : vector<128x128xf32>
      %33 = arith.truncf %32 : vector<128x128xf32> to vector<128x128xbf16>
      %34 = vector.shape_cast %33 : vector<128x128xbf16> to vector<1x128x128xbf16>
      %c0_27 = arith.constant 0 : index
      %c0_28 = arith.constant 0 : index
      %c0_29 = arith.constant 0 : index
      %35 = vector.load %arg14[%c0_27, %c0_28, %c0_29] : memref<1x128x128xbf16, #tpu.memory_space<vmem>>, vector<1x128x128xbf16>
      tpu.vector_store %arg14[%c0_27, %c0_28, %c0_29], %34 {strides = array<i32>} : memref<1x128x128xbf16, #tpu.memory_space<vmem>>, vector<1x128x128xbf16>,
      %36 = tpu.iota {dimensions = array<i32: 1>} : vector<1x128x1xi32>
      %37 = vector.broadcast %24 : vector<1x1x1xi32> to vector<1x128x1xi32>
      %38 = arith.cmpi slt, %36, %37 : vector<1x128x1xi32>
      %39 = arith.extui %38 : vector<1x128x1xi1> to vector<1x128x1xi32>
      %40 = arith.sitofp %39 : vector<1x128x1xi32> to vector<1x128x1xf32>
      %41 = arith.truncf %40 : vector<1x128x1xf32> to vector<1x128x1xbf16>
      %c1_i32 = arith.constant 1 : i32
      %42 = vector.broadcast %c1_i32 : i32 to vector<1x1x1xi32>
      %43 = arith.maxsi %24, %42 : vector<1x1x1xi32>
      %44 = arith.sitofp %43 : vector<1x1x1xi32> to vector<1x1x1xf32>
      "tpu.trace_start"() <{level = 10 : i32, message = "bsh,bsx->bxh"}> : () -> ()
      %cst_30 = arith.constant dense<0.000000e+00> : vector<1x1x128xf32>
      %45 = tpu.matmul %41, %34, %cst_30 {dimension_numbers = #tpu.dot_dimension_numbers<[1], [1], [2], [2], [0, 0, 0, 2, 1, 2], [0], [0]>} : vector<1x128x1xbf16>, vector<1x128x128xbf16>, vector<1x1x128xf32> -> vector<1x1x128xf32>
      "tpu.trace_stop"() : () -> ()
      %46 = vector.broadcast %44 : vector<1x1x1xf32> to vector<1x1x128xf32>
      %47 = arith.divf %45, %46 : vector<1x1x128xf32>
      %c0_31 = arith.constant 0 : index
      %c0_32 = arith.constant 0 : index
      %c0_33 = arith.constant 0 : index
      %48 = vector.load %arg15[%c0_31, %c0_32, %c0_33] : memref<1x1x128xf32, #tpu.memory_space<vmem>>, vector<1x1x128xf32>
      tpu.vector_store %arg15[%c0_31, %c0_32, %c0_33], %47 {strides = array<i32>} : memref<1x1x128xf32, #tpu.memory_space<vmem>>, vector<1x1x128xf32>,
      %c0_34 = arith.constant 0 : index
      %c0_35 = arith.constant 0 : index
      %c0_36 = arith.constant 0 : index
      %49 = vector.load %arg7[%c0_34, %c0_35, %c0_36] : memref<1x16x32xbf16, #tpu.memory_space<vmem>>, vector<1x16x32xbf16>
      %50 = vector.shape_cast %49 : vector<1x16x32xbf16> to vector<16x32xbf16>
      %c0_37 = arith.constant 0 : index
      %c0_38 = arith.constant 0 : index
      %51 = vector.load %arg8[%c0_37, %c0_38] : memref<32x128xbf16, #tpu.memory_space<vmem>>, vector<32x128xbf16>
      %cst_39 = arith.constant dense<0.000000e+00> : vector<16x128xf32>
      %52 = tpu.matmul %50, %51, %cst_39 {dimension_numbers = #tpu.dot_dimension_numbers<[1], [0], [0], [1], [0, 0, 1, 1], [], []>} : vector<16x32xbf16>, vector<32x128xbf16>, vector<16x128xf32> -> vector<16x128xf32>
      %53 = arith.truncf %52 : vector<16x128xf32> to vector<16x128xbf16>
      %54 = vector.shape_cast %53 : vector<16x128xbf16> to vector<1x16x128xbf16>
      "tpu.trace_start"() <{level = 10 : i32, message = "bth,bsh->bts"}> : () -> ()
      %cst_40 = arith.constant dense<0.000000e+00> : vector<1x16x128xf32>
      %55 = tpu.matmul %54, %34, %cst_40 {dimension_numbers = #tpu.dot_dimension_numbers<[2], [2], [1], [1], [0, 0, 0, 1, 1, 1], [0], [0]>} : vector<1x16x128xbf16>, vector<1x128x128xbf16>, vector<1x16x128xf32> -> vector<1x16x128xf32>
      "tpu.trace_stop"() : () -> ()
      %56 = tpu.iota {dimensions = array<i32: 2>} : vector<1x1x128xi32>
      %57 = vector.broadcast %24 : vector<1x1x1xi32> to vector<1x1x128xi32>
      %58 = arith.cmpi slt, %56, %57 : vector<1x1x128xi32>
      %cst_41 = arith.constant -1.000000e+30 : f32
      %59 = vector.shape_cast %58 : vector<1x1x128xi1> to vector<1x1x128xi1>
      %60 = vector.broadcast %59 : vector<1x1x128xi1> to vector<1x16x128xi1>
      %61 = vector.broadcast %cst_41 : f32 to vector<1x16x128xf32>
      %62 = arith.select %60, %55, %61 : vector<1x16x128xi1>, vector<1x16x128xf32>
      %cst_42 = arith.constant dense<0xFF800000> : vector<1x16xf32>
      %63 = vector.multi_reduction <maximumf>, %62, %cst_42 [2] : vector<1x16x128xf32> to vector<1x16xf32>
      %64 = vector.shape_cast %63 : vector<1x16xf32> to vector<1x16x1xf32>
      %65 = vector.broadcast %64 : vector<1x16x1xf32> to vector<1x16x128xf32>
      %66 = arith.subf %62, %65 : vector<1x16x128xf32>
      %67 = math.exp %66 : vector<1x16x128xf32>
      %cst_43 = arith.constant dense<0.000000e+00> : vector<1x16xf32>
      %68 = vector.multi_reduction <add>, %67, %cst_43 [2] : vector<1x16x128xf32> to vector<1x16xf32>
      %69 = vector.shape_cast %68 : vector<1x16xf32> to vector<1x16x1xf32>
      %70 = tpu.reciprocal %69 {approx = true} : vector<1x16x1xf32> -> vector<1x16x1xf32>
      %71 = vector.broadcast %70 : vector<1x16x1xf32> to vector<1x16x128xf32>
      %72 = arith.mulf %67, %71 : vector<1x16x128xf32>
      %73 = arith.truncf %72 : vector<1x16x128xf32> to vector<1x16x128xbf16>
      %c0_44 = arith.constant 0 : index
      %c0_45 = arith.constant 0 : index
      %c0_46 = arith.constant 0 : index
      %74 = vector.load %arg17[%c0_44, %c0_45, %c0_46] : memref<1x16x128xbf16, #tpu.memory_space<vmem>>, vector<1x16x128xbf16>
      tpu.vector_store %arg17[%c0_44, %c0_45, %c0_46], %73 {strides = array<i32>} : memref<1x16x128xbf16, #tpu.memory_space<vmem>>, vector<1x16x128xbf16>,
      %75 = arith.truncf %72 : vector<1x16x128xf32> to vector<1x16x128xbf16>
      "tpu.trace_start"() <{level = 10 : i32, message = "bts,bsh->bth"}> : () -> ()
      %cst_47 = arith.constant dense<0.000000e+00> : vector<1x16x128xf32>
      %76 = tpu.matmul %75, %34, %cst_47 {dimension_numbers = #tpu.dot_dimension_numbers<[2], [1], [1], [2], [0, 0, 0, 1, 1, 2], [0], [0]>} : vector<1x16x128xbf16>, vector<1x128x128xbf16>, vector<1x16x128xf32> -> vector<1x16x128xf32>
      "tpu.trace_stop"() : () -> ()
      %77 = vector.shape_cast %76 : vector<1x16x128xf32> to vector<16x128xf32>
      %78 = arith.truncf %77 : vector<16x128xf32> to vector<16x128xbf16>
      %c0_48 = arith.constant 0 : index
      %c0_49 = arith.constant 0 : index
      %79 = vector.load %arg9[%c0_48, %c0_49] : memref<128x128xbf16, #tpu.memory_space<vmem>>, vector<128x128xbf16>
      %cst_50 = arith.constant dense<0.000000e+00> : vector<16x128xf32>
      %80 = tpu.matmul %78, %79, %cst_50 {dimension_numbers = #tpu.dot_dimension_numbers<[1], [0], [0], [1], [0, 0, 1, 1], [], []>} : vector<16x128xbf16>, vector<128x128xbf16>, vector<16x128xf32> -> vector<16x128xf32>
      %c0_51 = arith.constant 0 : index
      %c0_52 = arith.constant 0 : index
      %81 = vector.load %arg10[%c0_51, %c0_52] : memref<128x128xbf16, #tpu.memory_space<vmem>>, vector<128x128xbf16>
      %cst_53 = arith.constant dense<0.000000e+00> : vector<16x128xf32>
      %82 = tpu.matmul %53, %81, %cst_53 {dimension_numbers = #tpu.dot_dimension_numbers<[1], [0], [0], [1], [0, 0, 1, 1], [], []>} : vector<16x128xbf16>, vector<128x128xbf16>, vector<16x128xf32> -> vector<16x128xf32>
      %83 = arith.addf %80, %82 : vector<16x128xf32>
      %c0_54 = arith.constant 0 : index
      %c0_55 = arith.constant 0 : index
      %84 = vector.load %arg11[%c0_54, %c0_55] : memref<1x128xf32, #tpu.memory_space<vmem>>, vector<1x128xf32>
      %85 = vector.broadcast %84 : vector<1x128xf32> to vector<16x128xf32>
      %86 = arith.addf %83, %85 : vector<16x128xf32>
      %87 = vector.shape_cast %86 : vector<16x128xf32> to vector<1x16x128xf32>
      %88 = vector.broadcast %47 : vector<1x1x128xf32> to vector<1x16x128xf32>
      %89 = arith.addf %87, %88 : vector<1x16x128xf32>
      %90 = math.tanh %89 : vector<1x16x128xf32>
      %c0_56 = arith.constant 0 : index
      %c0_57 = arith.constant 0 : index
      %c0_58 = arith.constant 0 : index
      %91 = vector.load %arg16[%c0_56, %c0_57, %c0_58] : memref<1x16x128xf32, #tpu.memory_space<vmem>>, vector<1x16x128xf32>
      tpu.vector_store %arg16[%c0_56, %c0_57, %c0_58], %90 {strides = array<i32>} : memref<1x16x128xf32, #tpu.memory_space<vmem>>, vector<1x16x128xf32>,
      %92 = arith.truncf %90 : vector<1x16x128xf32> to vector<1x16x128xbf16>
      %c0_59 = arith.constant 0 : index
      %c0_60 = arith.constant 0 : index
      %c0_61 = arith.constant 0 : index
      %93 = vector.load %arg19[%c0_59, %c0_60, %c0_61] : memref<1x16x128xbf16, #tpu.memory_space<vmem>>, vector<1x16x128xbf16>
      tpu.vector_store %arg19[%c0_59, %c0_60, %c0_61], %92 {strides = array<i32>} : memref<1x16x128xbf16, #tpu.memory_space<vmem>>, vector<1x16x128xbf16>,
    } else {
    }
    %c0 = arith.constant 0 : index
    %c0_1 = arith.constant 0 : index
    %c0_2 = arith.constant 0 : index
    %3 = vector.load %arg12[%c0, %c0_1, %c0_2] : memref<1x128x48xbf16, #tpu.memory_space<vmem>>, vector<1x128x48xbf16>
    %4 = vector.shape_cast %3 : vector<1x128x48xbf16> to vector<128x48xbf16>
    %c0_3 = arith.constant 0 : index
    %c0_4 = arith.constant 0 : index
    %5 = vector.load %arg13[%c0_3, %c0_4] : memref<48x128xbf16, #tpu.memory_space<vmem>>, vector<48x128xbf16>
    %cst = arith.constant dense<0.000000e+00> : vector<128x128xf32>
    %6 = tpu.matmul %4, %5, %cst {dimension_numbers = #tpu.dot_dimension_numbers<[1], [0], [0], [1], [0, 0, 1, 1], [], []>} : vector<128x48xbf16>, vector<48x128xbf16>, vector<128x128xf32> -> vector<128x128xf32>
    %7 = arith.truncf %6 : vector<128x128xf32> to vector<128x128xbf16>
    %8 = vector.shape_cast %7 : vector<128x128xbf16> to vector<1x128x128xbf16>
    %c0_5 = arith.constant 0 : index
    %c0_6 = arith.constant 0 : index
    %c0_7 = arith.constant 0 : index
    %9 = vector.load %arg19[%c0_5, %c0_6, %c0_7] : memref<1x16x128xbf16, #tpu.memory_space<vmem>>, vector<1x16x128xbf16>
    "tpu.trace_start"() <{level = 10 : i32, message = "bth,bvh->btv"}> : () -> ()
    %cst_8 = arith.constant dense<0.000000e+00> : vector<1x16x128xf32>
    %10 = tpu.matmul %9, %8, %cst_8 {dimension_numbers = #tpu.dot_dimension_numbers<[2], [2], [1], [1], [0, 0, 0, 1, 1, 1], [0], [0]>} : vector<1x16x128xbf16>, vector<1x128x128xbf16>, vector<1x16x128xf32> -> vector<1x16x128xf32>
    "tpu.trace_stop"() : () -> ()
    %c0_9 = arith.constant 0 : index
    %c0_10 = arith.constant 0 : index
    %c0_11 = arith.constant 0 : index
    %11 = vector.load %arg3[%c0_9, %c0_10, %c0_11] : memref<1x1x1xi32, #tpu.memory_space<vmem>>, vector<1x1x1xi32>
    %12 = tpu.iota {dimensions = array<i32: 2>} : vector<1x1x128xi32>
    %c128_i32 = arith.constant 128 : i32
    %13 = arith.muli %arg1, %c128_i32 : i32
    %14 = vector.broadcast %13 : i32 to vector<1x1x128xi32>
    %15 = arith.addi %12, %14 : vector<1x1x128xi32>
    %16 = vector.broadcast %11 : vector<1x1x1xi32> to vector<1x1x128xi32>
    %17 = arith.cmpi slt, %15, %16 : vector<1x1x128xi32>
    %cst_12 = arith.constant -1.000000e+30 : f32
    %18 = vector.shape_cast %17 : vector<1x1x128xi1> to vector<1x1x128xi1>
    %19 = vector.broadcast %18 : vector<1x1x128xi1> to vector<1x16x128xi1>
    %20 = vector.broadcast %cst_12 : f32 to vector<1x16x128xf32>
    %21 = arith.select %19, %10, %20 : vector<1x16x128xi1>, vector<1x16x128xf32>
    %22 = arith.truncf %21 : vector<1x16x128xf32> to vector<1x16x128xbf16>
    %c0_13 = arith.constant 0 : index
    %c0_14 = arith.constant 0 : index
    %c0_15 = arith.constant 0 : index
    %23 = vector.load %arg18[%c0_13, %c0_14, %c0_15] : memref<1x16x128xbf16, #tpu.memory_space<vmem>>, vector<1x16x128xbf16>
    tpu.vector_store %arg18[%c0_13, %c0_14, %c0_15], %22 {strides = array<i32>} : memref<1x16x128xbf16, #tpu.memory_space<vmem>>, vector<1x16x128xbf16>,
    return
  }
  func.func @transform_0(%arg0: i32, %arg1: i32) -> (i32, i32, i32) {
    %c0_i32 = arith.constant 0 : i32
    %c0_i32_0 = arith.constant 0 : i32
    %c0_i32_1 = arith.constant 0 : i32
    return %arg0, %c0_i32, %c0_i32_0 : i32, i32, i32
  }
  func.func @transform_1(%arg0: i32, %arg1: i32) -> (i32, i32, i32) {
    %c0_i32 = arith.constant 0 : i32
    %c0_i32_0 = arith.constant 0 : i32
    %c0_i32_1 = arith.constant 0 : i32
    return %arg0, %c0_i32, %c0_i32_0 : i32, i32, i32
  }
  func.func @transform_2(%arg0: i32, %arg1: i32) -> (i32, i32, i32) {
    %c0_i32 = arith.constant 0 : i32
    %c0_i32_0 = arith.constant 0 : i32
    %c0_i32_1 = arith.constant 0 : i32
    return %arg0, %c0_i32, %c0_i32_0 : i32, i32, i32
  }
  func.func @transform_3(%arg0: i32, %arg1: i32) -> (i32, i32) {
    %c0_i32 = arith.constant 0 : i32
    %c0_i32_0 = arith.constant 0 : i32
    %c0_i32_1 = arith.constant 0 : i32
    return %c0_i32, %c0_i32_0 : i32, i32
  }
  func.func @transform_4(%arg0: i32, %arg1: i32) -> (i32, i32) {
    %c0_i32 = arith.constant 0 : i32
    %c0_i32_0 = arith.constant 0 : i32
    %c0_i32_1 = arith.constant 0 : i32
    return %c0_i32, %c0_i32_0 : i32, i32
  }
  func.func @transform_5(%arg0: i32, %arg1: i32) -> (i32, i32, i32) {
    %c0_i32 = arith.constant 0 : i32
    %c0_i32_0 = arith.constant 0 : i32
    %c0_i32_1 = arith.constant 0 : i32
    return %arg0, %c0_i32, %c0_i32_0 : i32, i32, i32
  }
  func.func @transform_6(%arg0: i32, %arg1: i32) -> (i32, i32) {
    %c0_i32 = arith.constant 0 : i32
    %c0_i32_0 = arith.constant 0 : i32
    %c0_i32_1 = arith.constant 0 : i32
    return %c0_i32, %c0_i32_0 : i32, i32
  }
  func.func @transform_7(%arg0: i32, %arg1: i32) -> (i32, i32) {
    %c0_i32 = arith.constant 0 : i32
    %c0_i32_0 = arith.constant 0 : i32
    %c0_i32_1 = arith.constant 0 : i32
    return %c0_i32, %c0_i32_0 : i32, i32
  }
  func.func @transform_8(%arg0: i32, %arg1: i32) -> (i32, i32) {
    %c0_i32 = arith.constant 0 : i32
    %c0_i32_0 = arith.constant 0 : i32
    %c0_i32_1 = arith.constant 0 : i32
    return %c0_i32, %c0_i32_0 : i32, i32
  }
  func.func @transform_9(%arg0: i32, %arg1: i32) -> (i32, i32) {
    %c0_i32 = arith.constant 0 : i32
    %c0_i32_0 = arith.constant 0 : i32
    %c0_i32_1 = arith.constant 0 : i32
    return %c0_i32, %c0_i32_0 : i32, i32
  }
  func.func @transform_10(%arg0: i32, %arg1: i32) -> (i32, i32, i32) {
    %c0_i32 = arith.constant 0 : i32
    %c0_i32_0 = arith.constant 0 : i32
    return %arg0, %arg1, %c0_i32 : i32, i32, i32
  }
  func.func @transform_11(%arg0: i32, %arg1: i32) -> (i32, i32) {
    %c0_i32 = arith.constant 0 : i32
    %c0_i32_0 = arith.constant 0 : i32
    %c0_i32_1 = arith.constant 0 : i32
    return %c0_i32, %c0_i32_0 : i32, i32
  }
  func.func @transform_12(%arg0: i32, %arg1: i32) -> (i32, i32, i32) {
    %c0_i32 = arith.constant 0 : i32
    %c0_i32_0 = arith.constant 0 : i32
    %c0_i32_1 = arith.constant 0 : i32
    return %arg0, %c0_i32, %c0_i32_0 : i32, i32, i32
  }
  func.func @transform_13(%arg0: i32, %arg1: i32) -> (i32, i32, i32) {
    %c0_i32 = arith.constant 0 : i32
    %c0_i32_0 = arith.constant 0 : i32
    %c0_i32_1 = arith.constant 0 : i32
    return %arg0, %c0_i32, %c0_i32_0 : i32, i32, i32
  }
  func.func @transform_14(%arg0: i32, %arg1: i32) -> (i32, i32, i32) {
    %c0_i32 = arith.constant 0 : i32
    %c0_i32_0 = arith.constant 0 : i32
    %c0_i32_1 = arith.constant 0 : i32
    return %arg0, %c0_i32, %c0_i32_0 : i32, i32, i32
  }
  func.func @transform_15(%arg0: i32, %arg1: i32) -> (i32, i32, i32) {
    %c0_i32 = arith.constant 0 : i32
    %c0_i32_0 = arith.constant 0 : i32
    %c0_i32_1 = arith.constant 0 : i32
    return %arg0, %c0_i32, %c0_i32_0 : i32, i32, i32
  }
  func.func @transform_16(%arg0: i32, %arg1: i32) -> (i32, i32, i32) {
    %c0_i32 = arith.constant 0 : i32
    %c0_i32_0 = arith.constant 0 : i32
    return %arg0, %c0_i32, %arg1 : i32, i32, i32
  }
}

</mosaic_0001>

<bundles_post_ra>
// kernel: seq2seq_forward.1
= control target key start
LH: loop header
LB: loop body
LE: loop exit
PB: predicated region body
PF: predicated region fallthrough
CT: control target
= control target key end

     0   :  { %s3329_s0 = inlined_call_operand.vmem [shape: s32[2,1,1], index: 0, kind: input, shape index: {}]   ;;  %s3330_s1 = inlined_call_operand.vmem [shape: s32[2,1,1], index: 1, kind: input, shape index: {}]   ;;  %s3331_s2 = inlined_call_operand.vmem [shape: bf16[2,128,32], index: 2, kind: input, shape index: {}]   ;;  %s3332_s3 = inlined_call_operand.vmem [shape: bf16[32,128], index: 3, kind: input, shape index: {}]   ;;  %s3333_s4 = inlined_call_operand.vmem [shape: f32[1,128], index: 4, kind: input, shape index: {}]   ;;  %s3334_s5 = inlined_call_operand.vmem [shape: bf16[2,16,32], index: 5, kind: input, shape index: {}]   ;;  %s3335_s6 = inlined_call_operand.vmem [shape: bf16[32,128], index: 6, kind: input, shape index: {}]   ;;  %s3336_s7 = inlined_call_operand.vmem [shape: bf16[128,128], index: 7, kind: input, shape index: {}]   ;;  %s3337_s8 = inlined_call_operand.vmem [shape: bf16[128,128], index: 8, kind: input, shape index: {}]   ;;  %s3338_s9 = inlined_call_operand.vmem [shape: f32[1,128], index: 9, kind: input, shape index: {}]   ;;  %s3339_s10 = inlined_call_operand.vmem [shape: bf16[2,128,48], index: 10, kind: input, shape index: {}]   ;;  %s3340_s11 = inlined_call_operand.vmem [shape: bf16[48,128], index: 11, kind: input, shape index: {}]   ;;  %s3341_s12 = inlined_call_operand.vmem [shape: bf16[2,128,128], index: 12, kind: output, shape index: {0}]   ;;  %s3342_s13 = inlined_call_operand.hbm [shape: f32[2,1,128], index: 13, kind: output, shape index: {1}]   ;;  %s3343_s14 = inlined_call_operand.vmem [shape: f32[2,16,128], index: 14, kind: output, shape index: {2}]   ;;  %s3344_s15 = inlined_call_operand.vmem [shape: bf16[2,16,128], index: 15, kind: output, shape index: {3}]   ;;  %s3345_s16 = inlined_call_operand.vmem [shape: bf16[2,16,128], index: 16, kind: output, shape index: {4}]  }
   0x1   :  { %3349 = sst [smem:[#allocation9_spill]] %s3329_s0 }
   0x2   :  { %3350 = sst [smem:[#allocation10_spill]] %s3330_s1 }
   0x3   :  { %3351 = sst [smem:[#allocation11_spill]] %s3331_s2 }
   0x4   :  { %3352 = sst [smem:[#allocation12_spill]] %s3332_s3 }
   0x5   :  { %3353 = sst [smem:[#allocation13_spill]] %s3333_s4 }
   0x6   :  { %3354 = sst [smem:[#allocation14_spill]] %s3334_s5 }
   0x7   :  { %3355 = sst [smem:[#allocation15_spill]] %s3335_s6 }
   0x8   :  { %22 = vsyncpa [#allocation4], 0 }
   0x9   :  { %24 = vsyncpa [#allocation4 + $0x1], 0  ;;  %s2861_s21 = smov 0   ;;  %s2863_s22 = smov 0  }
   0xa   :  { %s2865_s23 = smov 0   ;;  %s2867_s24 = smov 0  }
   0xb   :  { %s2869_s25 = smov 0   ;;  %s2871_s26 = smov 0  }
   0xc LB: > { %3356 = sst [smem:[#allocation6_spill]] %s2766_s25  ;;  %s2097_s27 = sadd.s32 4294967295, %s2770_s26   ;;  %s2770_s26 = sphi %s2871_s26, %s30_s26   ;;  %s2766_s25 = sphi %s2869_s25, %s3372_s25   ;;  %s2762_s24 = sphi %s2867_s24, %s3371_s24   ;;  %s2758_s23 = sphi %s2865_s23, %s3375_s23   ;;  %s2754_s22 = sphi %s2863_s22, %s3374_s22   ;;  %s2750_s21 = sphi %s2861_s21, %s3373_s21  }
   0xd   : > { %s2098_s28 = sadd.s32 4294967294, %s2770_s26   ;;  %s42_s29 = sadd.s32 1, %s2766_s25 }
   0xe   : > { %s354_s30 = sadd.s32 1, %s2758_s23  ;;  %p44_p0 = scmp.ge.s32.totalorder %s42_s29, 2 }
   0xf   : > { %p364_p1 = scmp.ne.s32.totalorder %s2758_s23, %s2754_s22  ;;  %p365_p2 = scmp.eq.s32.totalorder %s2097_s27, 1 }
  0x10   : > { %p370_p3 = scmp.ne.s32.totalorder %s2754_s22, %s2750_s21  ;;  %s3377_s29 = smov (%p44_p0, %s42_s29), 0 }
  0x11   : > { %3357 = sst [smem:[#allocation7_spill]] %s3377_s29  ;;  %p2901_p4 = por %p365_p2, %p364_p1 }
  0x12   : > { %p371_p5 = scmp.eq.s32.totalorder %s2098_s28, 1  ;;  %s351_s17 = ssub.s32 %s2766_s25, %s3377_s29 }
  0x13   : > { %p2101_p6 = scmp.ge.s32.totalorder %s2770_s26, 1  ;;  %p352_p7 = scmp.eq.s32.totalorder %s351_s17, 0 }
  0x14   : > { %p2908_p8 = por %p371_p5, %p370_p3  ;;  %p531_p9 = scmp.lt.s32.totalorder %s2770_s26, 3 }
  0x15   : > { %s2914_s19 = scalar_select %p352_p7, %s2758_s23, %s354_s30  }
  0x16   : > { %p532_p10 = pnand %p2101_p6, %p531_p9 }
  0x17   : > { %3360 = sst [smem:[#allocation8_spill]] %s2914_s19  ;;  %s3361_s3 = sld [smem:[#allocation12_spill]] (!%p532_p10)  ;;  %v975_v1 = vlaneseq (!%p532_p10)  ;;  %v2772_v4 = vmov (!%p532_p10), 0.0   ;;  %vm757_vm0 = vcmask (!%p532_p10), 261120  }
  0x18   : > { %535 = sbr.rel (%p532_p10) target bundleno = 1721 (0x6b9), region = 68  ;;  %p623_p11 = scmp.lt.s32.totalorder (!%p532_p10), %s2762_s24, 1  ;;  %2444 = vmatprep.subr.bf16.mxu0 (!%p532_p10), %v2772_v4 }
  0x19   : > { %v2927_v3 = vshrl.u32 (!%p532_p10), %v975_v1, 7  ;;  %s3362_s27 = sld [smem:[#allocation9_spill]] (!%p532_p10)  ;;  %s3363_s2 = sld [smem:[#allocation11_spill]] (!%p532_p10) }
  0x1a   : > { %s3364_s5 = sld [smem:[#allocation14_spill]] (!%p532_p10)  ;;  %s3365_s4 = sld [smem:[#allocation13_spill]] (!%p532_p10) }
  0x1b   : > { %v2938_v5 = vsub.s32 (!%p532_p10), 0, %v2927_v3  ;;  %v977_v6 = vadd.s32 (!%p532_p10), 8, %v2927_v3  ;;  %v978_v7 = vadd.s32 (!%p532_p10), 16, %v2927_v3  ;;  %v979_v9 = vadd.s32 (!%p532_p10), 24, %v2927_v3  ;;  %s3366_s6 = sld [smem:[#allocation15_spill]] (!%p532_p10)  ;;  %s3348_s28 = sand.u32 (!%p532_p10), 1, %s2754_s22  }
  0x1c   : > { %v980_v12 = vadd.s32 (!%p532_p10), 32, %v2927_v3  ;;  %v981_v14 = vadd.s32 (!%p532_p10), 40, %v2927_v3  ;;  %v982_v16 = vadd.s32 (!%p532_p10), 48, %v2927_v3  ;;  %v983_v18 = vadd.s32 (!%p532_p10), 56, %v2927_v3  ;;  %s3154_s30 = scalar_lea.vmem (!%p532_p10), [#allocation3], %s3348_s28  ;;  %s3368_s1 = sld [smem:[#allocation10_spill]] (!%p532_p10) }
  0x1d   : > { %v2606_v0 = vld [vmem:[%s3361_s3] sm:$0xff] (!%p532_p10)   ;;  %v2607_v2 = vld [vmem:[%s3361_s3 + $0x8] sm:$0xff] (!%p532_p10)   ;;  %v984_v20 = vadd.s32 (!%p532_p10), 64, %v2927_v3  ;;  %v985_v24 = vadd.s32 (!%p532_p10), 72, %v2927_v3  ;;  %v986_v30 = vadd.s32 (!%p532_p10), 80, %v2927_v3  ;;  %v987_v31 = vadd.s32 (!%p532_p10), 88, %v2927_v3 }
  0x1e   : > { %2376 = vmatprep.subr.bf16.mxu1 (!%p532_p10), %v2606_v0  ;;  %v988_v32 = vadd.s32 (!%p532_p10), 96, %v2927_v3  ;;  %v989_v36 = vadd.s32 (!%p532_p10), 104, %v2927_v3  ;;  %v990_v40 = vadd.s32 (!%p532_p10), 112, %v2927_v3  ;;  %v991_v41 = vadd.s32 (!%p532_p10), 120, %v2927_v3 }
  0x1f   : > { %s2924_s17 = scalar_select %p623_p11, %s2762_s24, 1  ;;  %2377 = vmatpush3.bf16.msra.mxu1 %v2606_v0 }
  0x20   : > { %2378 = vmatprep.subr.bf16.mxu1 %v2607_v2  ;;  %v3037_v55 = vld [vmem:[%s3365_s4] ss:$0 sm:$0xff] }
  0x21   : > { %s625_s25 = scalar_lea.vmem %s3362_s27, %s2924_s17  ;;  %s2935_s19 = sshll.u32 %s2924_s17, 6 }
  0x22   : > { %s2946_s3 = scalar_lea.vmem %s3363_s2, %s2935_s19  ;;  %v2948_v8 = vld [vmem:[%s625_s25] sm:$0x1]  ;;  %s3012_s20 = scalar_lea.vmem %s3339_s10, %s2935_s19 }
  0x23   : > { %v2608_v10 = vld [vmem:[%s2946_s3] sm:$0xff]   ;;  %v2954_v11 = vrot.slane %v2948_v8, %v2938_v5  ;;  %2379 = vmatpush3.bf16.msra.mxu1 %v2607_v2  ;;  %v2609_v13 = vld [vmem:[%s2946_s3 + $0x8] sm:$0xff]   ;;  %v2610_v15 = vld [vmem:[%s2946_s3 + $0x10] sm:$0xff]   ;;  %s3051_s25 = scalar_lea.vmem %s3341_s12, %s2935_s19  ;;  %s2218_s27 = sshll.u32 %s2924_s17, 4 }
  0x24   : > { %2380 = vmatprep.mubr.msk.bf16.mxu1 %vm757_vm0, %v2608_v10  ;;  %2396 = vmatprep.subr.bf16.mxu1 %v2772_v4  ;;  %v2611_v26 = vld [vmem:[%s2946_s3 + $0x18] sm:$0xff]   ;;  %v2612_v29 = vld [vmem:[%s2946_s3 + $0x20] sm:$0xff]   ;;  %v2613_v39 = vld [vmem:[%s2946_s3 + $0x28] sm:$0xff]   ;;  %s658_s4 = scalar_lea.vmem %s3343_s14, %s2218_s27  ;;  %s2775_s27 = smov [#allocation3]  }
  0x25   : > { %vm996_vm1 = vcmp.lt.s32.totalorder %v2927_v3, %v2954_v11  ;;  %vm997_vm2 = vcmp.lt.s32.totalorder %v977_v6, %v2954_v11  ;;  %vm998_vm3 = vcmp.lt.s32.totalorder %v978_v7, %v2954_v11  ;;  %vm999_vm4 = vcmp.lt.s32.totalorder %v979_v9, %v2954_v11  ;;  %v2614_v42 = vld [vmem:[%s2946_s3 + $0x30] sm:$0xff]   ;;  %v2615_v49 = vld [vmem:[%s2946_s3 + $0x38] sm:$0xff]   ;;  %s3028_s3 = sshll.u32 %s2924_s17, 3 }
  0x26   : > { %v2151_v17 = vsel %vm996_vm1, 1.0, %v2772_v4  ;;  %2381 = vmatmul.mubr.msk.bf16.vlgmr.msra.gmra.mrb[0].mxu1 %vm757_vm0, %v2609_v13  ;;  %v2152_v19 = vsel %vm997_vm2, 1.0, %v2772_v4  ;;  %v2153_v22 = vsel %vm998_vm3, 1.0, %v2772_v4  ;;  %vm1000_vm5 = vcmp.lt.s32.totalorder %v980_v12, %v2954_v11  ;;  %s3367_s19 = scalar_lea.vmem %s3364_s5, %s3028_s3  ;;  %s663_s29 = scalar_lea.vmem %s3344_s15, %s3028_s3 }
  0x27   : > { %2384 = vmatprep.mubr.msk.bf16.mxu1 %vm757_vm0, %v2610_v15  ;;  %v1044_v21 = vpack.c.bf16 %v2152_v19, %v2151_v17  ;;  %vm1001_vm6 = vcmp.lt.s32.totalorder %v981_v14, %v2954_v11  ;;  %v2154_v23 = vsel %vm999_vm4, 1.0, %v2772_v4  ;;  %v2155_v27 = vsel %vm1000_vm5, 1.0, %v2772_v4  ;;  %s2211_s5 = sshll.u32 %s2762_s24, 4 }
  0x28   : > { %v1045_v25 = vpack.c.bf16 %v2154_v23, %v2153_v22  ;;  %v2156_v28 = vsel %vm1001_vm6, 1.0, %v2772_v4  ;;  %vm1002_vm7 = vcmp.lt.s32.totalorder %v982_v16, %v2954_v11  ;;  %vm1003_vm8 = vcmp.lt.s32.totalorder %v983_v18, %v2954_v11 }
  0x29   : > { %1055 = vxpose.xlu0.c.b16.start [1/8] (narrow) %v1044_v21, 16  ;;  %vm1004_vm9 = vcmp.lt.s32.totalorder %v984_v20, %v2954_v11  ;;  %vm1005_vm10 = vcmp.lt.s32.totalorder %v985_v24, %v2954_v11  ;;  %v1046_v33 = vpack.c.bf16 %v2156_v28, %v2155_v27  ;;  %v2157_v34 = vsel %vm1002_vm7, 1.0, %v2772_v4 }
  0x2a   : > { %v2158_v35 = vsel %vm1003_vm8, 1.0, %v2772_v4  ;;  %vm1006_vm11 = vcmp.lt.s32.totalorder %v986_v30, %v2954_v11  ;;  %vm1007_vm12 = vcmp.lt.s32.totalorder %v987_v31, %v2954_v11  ;;  %vm1008_vm13 = vcmp.lt.s32.totalorder %v988_v32, %v2954_v11 }
  0x2b   : > { %v2159_v37 = vsel %vm1004_vm9, 1.0, %v2772_v4  ;;  %v2160_v38 = vsel %vm1005_vm10, 1.0, %v2772_v4  ;;  %v1047_v43 = vpack.c.bf16 %v2158_v35, %v2157_v34  ;;  %v2161_v44 = vsel %vm1006_vm11, 1.0, %v2772_v4 }
  0x2c   : > { %v2162_v45 = vsel %vm1007_vm12, 1.0, %v2772_v4  ;;  %v2163_v46 = vsel %vm1008_vm13, 1.0, %v2772_v4  ;;  %vm1009_vm14 = vcmp.lt.s32.totalorder %v989_v36, %v2954_v11  ;;  %v1048_v47 = vpack.c.bf16 %v2160_v38, %v2159_v37 }
  0x2d   : > { %1056 = vxpose.xlu0.c.b16.cont [2/8] (narrow) %v1045_v25, 16  ;;  %v2164_v48 = vsel %vm1009_vm14, 1.0, %v2772_v4  ;;  %vm1010_vm15 = vcmp.lt.s32.totalorder %v990_v40, %v2954_v11  ;;  %v1049_v50 = vpack.c.bf16 %v2162_v45, %v2161_v44  ;;  %vm1011_vm1 = vcmp.lt.s32.totalorder %v991_v41, %v2954_v11 }
  0x2e   : > { %2385 = vmatmul.mubr.msk.bf16.gmra.mrb[4].mxu1 %vm757_vm0, %v2611_v26  ;;  %v2165_v51 = vsel %vm1010_vm15, 1.0, %v2772_v4  ;;  %v1050_v52 = vpack.c.bf16 %v2164_v48, %v2163_v46  ;;  %v2166_v53 = vsel %vm1011_vm1, 1.0, %v2772_v4  ;;  %vm2773_vm2 = vmmov 0  }
  0x2f   : > { %2388 = vmatprep.mubr.msk.bf16.mxu1 %vm757_vm0, %v2612_v29  ;;  %v1051_v54 = vpack.c.bf16 %v2166_v53, %v2165_v51  ;;  %2460 = vmatprep.mubr.msk.bf16.mxu0 %vm2773_vm2, %v2772_v4  ;;  %v2616_v53 = vld [vmem:[%s3366_s6] sm:$0xff]   ;;  %vm1052_vm3 = vcmp.gt.s32.totalorder %v2948_v8, 1  ;;  %vm1627_vm4 = vcmask 392192  }
  0x31   : > { %1057 = vxpose.xlu0.c.b16.cont [3/8] (narrow) %v1046_v33, 16 }
  0x35   : > { %1058 = vxpose.xlu0.c.b16.cont [4/8] (narrow) %v1047_v43, 16 }
  0x36   : > { %2389 = vmatmul.mubr.msk.bf16.gmra.mrb[8].mxu1 %vm757_vm0, %v2613_v39 }
  0x37   : > { %2392 = vmatprep.mubr.msk.bf16.mxu1 %vm757_vm0, %v2614_v42 }
  0x39   : > { %1059 = vxpose.xlu0.c.b16.cont [5/8] (narrow) %v1048_v47, 16 }
  0x3d   : > { %1060 = vxpose.xlu0.c.b16.cont [6/8] (narrow) %v1049_v50, 16 }
  0x3e   : > { %2393 = vmatmul.mubr.msk.bf16.gmra.mrb[12].mxu1 %vm757_vm0, %v2615_v49 }
  0x3f   : > { %2412 = vmatprep.mubr.msk.bf16.mxu1 %vm2773_vm2, %v2772_v4 }
  0x41   : > { %1061 = vxpose.xlu0.c.b16.cont [7/8] (narrow) %v1050_v52, 16 }
  0x45   : > { %1062 = vxpose.xlu0.c.b16.end [8/8] (narrow) %v1051_v54, 16  ;;  %v2617_v54 = vld [vmem:[%s3366_s6 + $0x8] sm:$0xff]  }
  0x8f   : > { %v1063_v52 = vpop.trf.xlu0 }
  0xf9   : > { %v2382_v56 = vpop.f32.mrb[0].mxu1 }
  0xfa   : > { %v825_v57 = vadd.f32 %v2382_v56, %v3037_v55  ;;  %v816_v58 = vpop.f32.mrb[1].mxu1  ;;  %v2774_v56 = vmov 0  }
  0xfb   : > { %v817_v59 = vadd.f32 %v3037_v55, %v816_v58  ;;  %v2383_v60 = vpop.f32.mrb[2].mxu1  ;;  %2604 = vset.pattern.permute.xlu1 %v2774_v56  ;;  %2605 = vset.pattern.permute.xlu0 %v2774_v56  ;;  %v2633_v56 = vld [vmem:[%s3012_s20 + $0x18] sm:$0xff]  }
  0xfc   : > { %2646 = vtanh.f32 %v825_v57  ;;  %v828_v61 = vadd.f32 %v2383_v60, %v3037_v55  ;;  %v819_v62 = vpop.f32.mrb[3].mxu1  ;;  %1235 = vperm.xlu1 %2604, %v2948_v8  }
  0xfd   : > { %2648 = vtanh.f32 %v817_v59  ;;  %v820_v63 = vadd.f32 %v3037_v55, %v819_v62 }
  0xfe   : > { %2650 = vtanh.f32 %v828_v61 }
  0xff   : > { %2652 = vtanh.f32 %v820_v63 }
 0x101   : > { %v2386_v0 = vpop.f32.mrb[4].mxu1 }
 0x102   : > { %v841_v2 = vadd.f32 %v2386_v0, %v3037_v55  ;;  %v832_v3 = vpop.f32.mrb[5].mxu1 }
 0x103   : > { %v833_v6 = vadd.f32 %v3037_v55, %v832_v3  ;;  %v2387_v7 = vpop.f32.mrb[6].mxu1 }
 0x104   : > { %2654 = vtanh.f32 %v841_v2  ;;  %v844_v9 = vadd.f32 %v2387_v7, %v3037_v55  ;;  %v835_v10 = vpop.f32.mrb[7].mxu1  ;;  %v3143_v7 = vand.u32 127, %v975_v1 }
 0x105   : > { %2656 = vtanh.f32 %v833_v6  ;;  %v836_v11 = vadd.f32 %v3037_v55, %v835_v10 }
 0x106   : > { %v2647_v12 = vpop.eup %2646  ;;  %2658 = vtanh.f32 %v844_v9 }
 0x107   : > { %v2649_v13 = vpop.eup %2648  ;;  %2660 = vtanh.f32 %v836_v11 }
 0x108   : > { %v2651_v14 = vpop.eup %2650 }
 0x109   : > { %v2653_v15 = vpop.eup %2652  ;;  %v2390_v16 = vpop.f32.mrb[8].mxu1  ;;  %v3053_v17 = vpack.c.bf16 %v2651_v14, %v2647_v12 }
 0x10a   : > { %v857_v18 = vadd.f32 %v2390_v16, %v3037_v55  ;;  %v848_v19 = vpop.f32.mrb[9].mxu1  ;;  %v3056_v20 = vpack.c.bf16 %v2653_v15, %v2649_v13  ;;  %v1053_v15 = vsel %vm1052_vm3, %v2948_v8, 1 }
 0x10b   : > { %v849_v21 = vadd.f32 %v3037_v55, %v848_v19  ;;  %v2391_v22 = vpop.f32.mrb[10].mxu1  ;;  %2291 = vst [vmem:[%s3051_s25 + $0x8] sm:$0xff] %v3053_v17   ;;  %v1054_v16 = vcvt.s32.f32 %v1053_v15 }
 0x10c   : > { %2662 = vtanh.f32 %v857_v18  ;;  %v860_v23 = vadd.f32 %v2391_v22, %v3037_v55  ;;  %v851_v24 = vpop.f32.mrb[11].mxu1  ;;  %2245 = vst [vmem:[%s3051_s25] sm:$0xff] %v3056_v20   ;;  %2397 = vmatpush3.bf16.msra.mxu1 %v3056_v20  ;;  %2445 = vmatpush3.bf16.msra.mxu0 %v3056_v20 }
 0x10d   : > { %2664 = vtanh.f32 %v849_v21  ;;  %v852_v25 = vadd.f32 %v3037_v55, %v851_v24  ;;  %2398 = vmatprep.subr.bf16.mxu1 %v2772_v4  ;;  %2446 = vmatprep.subr.bf16.mxu0 %v2772_v4 }
 0x10e   : > { %v2655_v26 = vpop.eup %2654  ;;  %2666 = vtanh.f32 %v860_v23 }
 0x10f   : > { %v2657_v27 = vpop.eup %2656  ;;  %2668 = vtanh.f32 %v852_v25 }
 0x110   : > { %v2659_v28 = vpop.eup %2658  ;;  %2399 = vmatpush3.bf16.msra.mxu1 %v3053_v17  ;;  %2447 = vmatpush3.bf16.msra.mxu0 %v3053_v17 }
 0x111   : > { %v2661_v29 = vpop.eup %2660  ;;  %v2394_v30 = vpop.f32.mrb[12].mxu1  ;;  %2400 = vmatprep.subr.bf16.mxu1 %v2772_v4  ;;  %2448 = vmatprep.subr.bf16.mxu0 %v2772_v4  ;;  %v3073_v31 = vpack.c.bf16 %v2659_v28, %v2655_v26  ;;  %v2634_v28 = vld [vmem:[%s3336_s7] sm:$0xff]  }
 0x112   : > { %v873_v32 = vadd.f32 %v2394_v30, %v3037_v55  ;;  %v864_v33 = vpop.f32.mrb[13].mxu1  ;;  %v3076_v34 = vpack.c.bf16 %v2661_v29, %v2657_v27  ;;  %v2635_v29 = vld [vmem:[%s3336_s7 + $0x8] sm:$0xff]   ;;  %v2638_v30 = vld [vmem:[%s3336_s7 + $0x10] sm:$0xff]  }
 0x113   : > { %v865_v35 = vadd.f32 %v3037_v55, %v864_v33  ;;  %v2395_v36 = vpop.f32.mrb[14].mxu1  ;;  %2293 = vst [vmem:[%s3051_s25 + $0x18] sm:$0xff] %v3073_v31   ;;  %v2641_v33 = vld [vmem:[%s3336_s7 + $0x28] sm:$0xff]  }
 0x114   : > { %2670 = vtanh.f32 %v873_v32  ;;  %v876_v37 = vadd.f32 %v2395_v36, %v3037_v55  ;;  %v867_v38 = vpop.f32.mrb[15].mxu1  ;;  %2292 = vst [vmem:[%s3051_s25 + $0x10] sm:$0xff] %v3076_v34   ;;  %2401 = vmatpush3.bf16.msra.mxu1 %v3076_v34  ;;  %2449 = vmatpush3.bf16.msra.mxu0 %v3076_v34  ;;  %v2640_v32 = vld [vmem:[%s3336_s7 + $0x20] sm:$0xff]  }
 0x115   : > { %2672 = vtanh.f32 %v865_v35  ;;  %v868_v39 = vadd.f32 %v3037_v55, %v867_v38  ;;  %2402 = vmatprep.subr.bf16.mxu1 %v2772_v4  ;;  %2450 = vmatprep.subr.bf16.mxu0 %v2772_v4  ;;  %v2618_v55 = vld [vmem:[%s3367_s19] sm:$0xff]   ;;  %s3369_s19 = sand.u32 1, %s2754_s22  }
 0x116   : > { %v2663_v40 = vpop.eup %2662  ;;  %2674 = vtanh.f32 %v876_v37 }
 0x117   : > { %v2665_v41 = vpop.eup %2664  ;;  %2676 = vtanh.f32 %v868_v39 }
 0x118   : > { %v2667_v42 = vpop.eup %2666  ;;  %2403 = vmatpush3.bf16.msra.mxu1 %v3073_v31  ;;  %2451 = vmatpush3.bf16.msra.mxu0 %v3073_v31 }
 0x119   : > { %v2669_v43 = vpop.eup %2668  ;;  %2404 = vmatprep.subr.bf16.mxu1 %v2772_v4  ;;  %2452 = vmatprep.subr.bf16.mxu0 %v2772_v4  ;;  %v900_v44 = vpack.c.bf16 %v2667_v42, %v2663_v40 }
 0x11a   : > { %v899_v45 = vpack.c.bf16 %v2669_v43, %v2665_v41  ;;  %v2619_v41 = vld [vmem:[%s3337_s8] sm:$0xff]   ;;  %v2620_v43 = vld [vmem:[%s3337_s8 + $0x8] sm:$0xff]  }
 0x11b   : > { %2295 = vst [vmem:[%s3051_s25 + $0x28] sm:$0xff] %v900_v44  }
 0x11c   : > { %2294 = vst [vmem:[%s3051_s25 + $0x20] sm:$0xff] %v899_v45   ;;  %2405 = vmatpush3.bf16.msra.mxu1 %v899_v45  ;;  %2453 = vmatpush3.bf16.msra.mxu0 %v899_v45 }
 0x11d   : > { %2406 = vmatprep.subr.bf16.mxu1 %v2772_v4  ;;  %2454 = vmatprep.subr.bf16.mxu0 %v2772_v4 }
 0x11e   : > { %v2671_v46 = vpop.eup %2670 }
 0x11f   : > { %v2673_v47 = vpop.eup %2672 }
 0x120   : > { %v2675_v48 = vpop.eup %2674  ;;  %2407 = vmatpush3.bf16.msra.mxu1 %v900_v44  ;;  %2455 = vmatpush3.bf16.msra.mxu0 %v900_v44 }
 0x121   : > { %v2677_v49 = vpop.eup %2676  ;;  %2408 = vmatprep.subr.bf16.mxu1 %v2772_v4  ;;  %2456 = vmatprep.subr.bf16.mxu0 %v2772_v4  ;;  %v902_v50 = vpack.c.bf16 %v2675_v48, %v2671_v46  ;;  %v2623_v46 = vld [vmem:[%s3337_s8 + $0x20] sm:$0xff]   ;;  %v2625_v48 = vld [vmem:[%s3337_s8 + $0x30] sm:$0xff]  }
 0x122   : > { %v901_v51 = vpack.c.bf16 %v2677_v49, %v2673_v47  ;;  %v2624_v47 = vld [vmem:[%s3337_s8 + $0x28] sm:$0xff]   ;;  %v2626_v49 = vld [vmem:[%s3337_s8 + $0x38] sm:$0xff]  }
 0x123   : > { %2297 = vst [vmem:[%s3051_s25 + $0x38] sm:$0xff] %v902_v50  }
 0x124   : > { %2296 = vst [vmem:[%s3051_s25 + $0x30] sm:$0xff] %v901_v51   ;;  %2409 = vmatpush3.bf16.msra.mxu1 %v901_v51  ;;  %2457 = vmatpush3.bf16.msra.mxu0 %v901_v51  ;;  %s628_s25 = scalar_lea.vmem %s3368_s1, %s2924_s17  ;;  %s1833_s17 = scalar_lea.sflag [#allocation4], %s3369_s19 }
 0x125   : > { %2410 = vmatprep.subr.bf16.mxu1 %v2772_v4  ;;  %2458 = vmatprep.subr.bf16.mxu0 %v2772_v4  ;;  %v1799_v27 = vld [vmem:[%s628_s25] sm:$0x1]  ;;  %s1866_s25 = sshll.u32 %s3154_s30, 4  ;;  %s1867_s25 = int_to_ptr.vmem [resolvable:$true] %s1866_s25 }
 0x126   : > { %s2692_s1 = scalar_lea.vmem %s1867_s25, 16 }
 0x127   : > { %p2693_p12 = scmp.ne.s32.totalorder %s1867_s25, %s2692_s1 }
 0x128   : > { %2411 = vmatpush3.bf16.msra.mxu1 %v902_v50  ;;  %2459 = vmatpush3.bf16.msra.mxu0 %v902_v50 }
 0x129   : > { %2416 = vmatprep.subr.bf16.mxu1 %v2772_v4  ;;  %2464 = vmatprep.subr.bf16.mxu0 %v2772_v4  ;;  %p2694_p13 = pnand %p2693_p12, %p2901_p4 }
 0x12b   : > { %2413 = vmatmul.mubr.bf16.vlgmr.msra.gmra.mrb[16].mxu1 %v1063_v52  ;;  %v2628_v52 = vld [vmem:[%s3340_s11 + $0x8] sm:$0xff]   ;;  %p2695_p0 = pneg %p2694_p13 }
 0x12c   : > { %2417 = vmatpush3.bf16.msra.mxu1 %v2616_v53  ;;  %2420 = vmatprep.mubr.msk.bf16.mxu1 %vm2773_vm2, %v2772_v4  ;;  %v2629_v53 = vld [vmem:[%s3340_s11 + $0x10] sm:$0xff]  }
 0x12d   : > { %2418 = vmatprep.subr.bf16.mxu1 %v2772_v4 }
 0x130   : > { %2419 = vmatpush3.bf16.msra.mxu1 %v2617_v54  ;;  %v2631_v54 = vld [vmem:[%s3012_s20 + $0x8] sm:$0xff]  }
 0x131   : > { %2424 = vmatprep.subr.bf16.mxu1 %v2772_v4 }
 0x133   : > { %2421 = vmatmul.mubr.msk.bf16.vlgmr.msra.gmra.mrb[20].mxu1 %vm757_vm0, %v2618_v55  ;;  %v2632_v55 = vld [vmem:[%s3012_s20 + $0x10] sm:$0xff]  }
 0x134   : > { %2440 = vmatprep.mubr.msk.bf16.mxu1 %vm2773_vm2, %v2772_v4 }
 0x139   : > { %2425 = vmatpush3.bf16.xpose.msra.mxu1 %v3056_v20 }
 0x13a   : > { %2426 = vmatprep.subr.bf16.mxu1 %v2772_v4 }
 0x141   : > { %2427 = vmatpush3.bf16.xpose.msra.mxu1 %v3053_v17 }
 0x142   : > { %2428 = vmatprep.subr.bf16.mxu1 %v2772_v4 }
 0x149   : > { %2429 = vmatpush3.bf16.xpose.msra.mxu1 %v3076_v34  ;;  %v2644_v34 = vld [vmem:[%s3336_s7 + $0x30] sm:$0xff]  }
 0x14a   : > { %2430 = vmatprep.subr.bf16.mxu1 %v2772_v4 }
 0x151   : > { %2431 = vmatpush3.bf16.xpose.msra.mxu1 %v3073_v31  ;;  %v2639_v31 = vld [vmem:[%s3336_s7 + $0x18] sm:$0xff]  }
 0x152   : > { %2432 = vmatprep.subr.bf16.mxu1 %v2772_v4 }
 0x159   : > { %2433 = vmatpush3.bf16.xpose.msra.mxu1 %v899_v45  ;;  %v2622_v45 = vld [vmem:[%s3337_s8 + $0x18] sm:$0xff]  }
 0x15a   : > { %2434 = vmatprep.subr.bf16.mxu1 %v2772_v4 }
 0x161   : > { %2435 = vmatpush3.bf16.xpose.msra.mxu1 %v900_v44  ;;  %v2621_v44 = vld [vmem:[%s3337_s8 + $0x10] sm:$0xff]  }
 0x162   : > { %2436 = vmatprep.subr.bf16.mxu1 %v2772_v4 }
 0x169   : > { %2437 = vmatpush3.bf16.xpose.msra.mxu1 %v901_v51  ;;  %v2630_v51 = vld [vmem:[%s3012_s20] sm:$0xff]  }
 0x16a   : > { %2438 = vmatprep.subr.bf16.mxu1 %v2772_v4 }
 0x171   : > { %2439 = vmatpush3.bf16.xpose.msra.mxu1 %v902_v50  ;;  %v2627_v50 = vld [vmem:[%s3340_s11] sm:$0xff]  }
 0x172   : > { %2484 = vmatprep.subr.bf16.mxu1 %v2772_v4 }
 0x17b   : > { %v1236_v3 = vpop.permute.xlu1 %1235 }
 0x17c   : > { %v1240_v6 = vrot.slane %v1236_v3, %v2938_v5 }
 0x17e   : > { %vm1241_vm0 = vcmp.lt.s32.totalorder %v3143_v7, %v1240_v6 }
 0x1fe   : > { %v1105_v57 = vpop.f32.mrb[16].mxu1 }
 0x1ff   : > { %v2414_v58 = vpop.f32.mrb[17].mxu1 }
 0x200   : > { %v1108_v59 = vpop.f32.mrb[18].mxu1  ;;  %v2637_v58 = vld [vmem:[%s3012_s20 + $0x28] sm:$0xff]  }
 0x201   : > { %v2415_v60 = vpop.f32.mrb[19].mxu1  ;;  %v2642_v59 = vld [vmem:[%s3012_s20 + $0x30] sm:$0xff]  }
 0x202   : > { %v2643_v60 = vld [vmem:[%s3012_s20 + $0x38] sm:$0xff]  }
 0x206   : > { %v1183_v61 = vpop.f32.mrb[20].mxu1 }
 0x207   : > { %v2422_v62 = vpop.f32.mrb[21].mxu1 }
 0x208   : > { %v1186_v63 = vpop.f32.mrb[22].mxu1 }
 0x209   : > { %v3136_v0 = vpack.c.bf16 %v1186_v63, %v1183_v61  ;;  %v2423_v2 = vpop.f32.mrb[23].mxu1  ;;  %v2645_v61 = vld [vmem:[%s3336_s7 + $0x38] sm:$0xff]  }
 0x20b   : > { %2441 = vmatmul.mubr.bf16.vlgmr.msra.gmra.mrb[24].mxu1 %v3136_v0 }
 0x20c   : > { %2500 = vmatprep.mubr.msk.bf16.mxu1 %vm2773_vm2, %v2772_v4  ;;  %2485 = vmatpush3.bf16.msra.mxu1 %v2634_v28 }
 0x20d   : > { %2486 = vmatprep.subr.bf16.mxu1 %v2772_v4 }
 0x210   : > { %2487 = vmatpush3.bf16.msra.mxu1 %v2635_v29 }
 0x211   : > { %2488 = vmatprep.subr.bf16.mxu1 %v2772_v4 }
 0x214   : > { %2489 = vmatpush3.bf16.msra.mxu1 %v2638_v30 }
 0x215   : > { %2490 = vmatprep.subr.bf16.mxu1 %v2772_v4 }
 0x218   : > { %2491 = vmatpush3.bf16.msra.mxu1 %v2639_v31 }
 0x219   : > { %2492 = vmatprep.subr.bf16.mxu1 %v2772_v4 }
 0x21c   : > { %2493 = vmatpush3.bf16.msra.mxu1 %v2640_v32 }
 0x21d   : > { %2494 = vmatprep.subr.bf16.mxu1 %v2772_v4 }
 0x220   : > { %2495 = vmatpush3.bf16.msra.mxu1 %v2641_v33 }
 0x221   : > { %2496 = vmatprep.subr.bf16.mxu1 %v2772_v4 }
 0x224   : > { %2497 = vmatpush3.bf16.msra.mxu1 %v2644_v34 }
 0x225   : > { %2498 = vmatprep.subr.bf16.mxu1 %v2772_v4 }
 0x228   : > { %2499 = vmatpush3.bf16.msra.mxu1 %v2645_v61 }
 0x2de   : > { %v1225_v9 = vpop.f32.mrb[24].mxu1 }
 0x2df   : > { %v2442_v10 = vpop.f32.mrb[25].mxu1  ;;  %v1244_v11 = vsel %vm1241_vm0, %v1225_v9, -1e+30 }
 0x2e0   : > { %1246 = vmax.xlane.f32.xlu1 %v1244_v11  ;;  %v1228_v12 = vpop.f32.mrb[26].mxu1 }
 0x2e1   : > { %v2443_v13 = vpop.f32.mrb[27].mxu1  ;;  %v1245_v14 = vsel %vm1241_vm0, %v1228_v12, -1e+30 }
 0x2e2   : > { %1248 = vmax.xlane.f32.xlu0 %v1245_v14 }
 0x2f8   : > { %1113 = vperm.xlu0 %2605, %v1054_v16  }
 0x36d   : > { %v1247_v17 = vpop.xlane.xlu1 %1246 }
 0x36e   : > { %v1250_v1 = vsub.f32 %v1244_v11, %v1247_v17 }
 0x36f   : > { %v1249_v18 = vpop.xlane.xlu0 %1248 }
 0x370   : > { %v1252_v19 = vmul.f32 1.442695, %v1250_v1  ;;  %v1251_v20 = vsub.f32 %v1245_v14, %v1249_v18 }
 0x372   : > { %2678 = vpow2.f32 %v1252_v19  ;;  %v1254_v21 = vmul.f32 1.442695, %v1251_v20 }
 0x374   : > { %2680 = vpow2.f32 %v1254_v21 }
 0x377   : > { %v1114_v22 = vpop.permute.xlu0 %1113 }
 0x378   : > { %v1119_v23 = vrot.slane %v1114_v22, %v2938_v5 }
 0x37a   : > { %2682 = vrcp.f32 %v1119_v23 }
 0x37c   : > { %v2679_v24 = vpop.eup %2678 }
 0x37d   : > { %1256 = vadd.xlane.f32.xlu1 %v2679_v24 }
 0x37e   : > { %v2681_v8 = vpop.eup %2680 }
 0x381   : > { %1258 = vadd.xlane.f32.xlu1 %v2681_v8 }
 0x384   : > { %v2683_v25 = vpop.eup %2682 }
 0x385   : > { %v3150_v26 = vmul.f32 %v2683_v25, %v1105_v57  ;;  %v2636_v57 = vld [vmem:[%s3012_s20 + $0x20] sm:$0xff]   ;;  %s3280_s20 = scalar_lea.hbm %s3342_s13, %s2211_s5 }
 0x387   : > { %1122 = vst [vmem:[%s3154_s30] sm:$0x1] %v3150_v26 }
 0x392   : > { %1806 = vperm.xlu1 %2604, %v1799_v27  }
 0x40a   : > { %v1257_v35 = vpop.xlane.xlu1 %1256 }
 0x40b   : > { %2684 = vrcp.f32 %v1257_v35 }
 0x40e   : > { %v1259_v36 = vpop.xlane.xlu1 %1258 }
 0x40f   : > { %2686 = vrcp.f32 %v1259_v36  ;;  %v2189_v36 = vld [vmem:[%s3338_s9] ss:$0 sm:$0xff] }
 0x415   : > { %v2685_v37 = vpop.eup %2684 }
 0x416   : > { %v1262_v39 = vmul.f32 %v2685_v37, %v2679_v24 }
 0x419   : > { %v2687_v38 = vpop.eup %2686 }
 0x41a   : > { %v1263_v40 = vmul.f32 %v2687_v38, %v2681_v8 }
 0x41c   : > { %v1264_v42 = vpack.c.bf16 %v1263_v40, %v1262_v39 }
 0x41e   : > { %2285 = vst [vmem:[%s663_s29] sm:$0xff] %v1264_v42   ;;  %2461 = vmatmul.mubr.bf16.vlgmr.msra.gmra.mrb[0].mxu0 %v1264_v42  ;;  %s2696_s29 = sshll.u32 %s2775_s27, 4  ;;  %s2697_s29 = int_to_ptr.vmem [resolvable:$false] %s2696_s29 }
 0x41f   : > { %2465 = vmatpush3.bf16.msra.mxu0 %v2619_v41  ;;  %2480 = vmatprep.mubr.msk.bf16.mxu0 %vm2773_vm2, %v2772_v4  ;;  %v1538_v41 = vrot.slane %v3150_v26, %v2938_v5  ;;  %s2698_s2 = scalar_lea.vmem %s2697_s29, 32  ;;  %p2699_p1 = scmp.lt.s32.totalorder %s1867_s25, %s2697_s29 }
 0x420   : > { %2466 = vmatprep.subr.bf16.mxu0 %v2772_v4  ;;  %p2700_p2 = scmp.lt.s32.totalorder %s2698_s2, %s2692_s1 }
 0x422   : > { %p2701_p3 = por %p2700_p2, %p2699_p1 }
 0x423   : > { %2467 = vmatpush3.bf16.msra.mxu0 %v2620_v43 }
 0x424   : > { %2468 = vmatprep.subr.bf16.mxu0 %v2772_v4  ;;  %p2702_p5 = pnand %p2701_p3, %p2695_p0 }
 0x427   : > { %2469 = vmatpush3.bf16.msra.mxu0 %v2621_v44 }
 0x428   : > { %2470 = vmatprep.subr.bf16.mxu0 %v2772_v4 }
 0x42b   : > { %2471 = vmatpush3.bf16.msra.mxu0 %v2622_v45 }
 0x42c   : > { %2472 = vmatprep.subr.bf16.mxu0 %v2772_v4 }
 0x42f   : > { %2473 = vmatpush3.bf16.msra.mxu0 %v2623_v46 }
 0x430   : > { %2474 = vmatprep.subr.bf16.mxu0 %v2772_v4 }
 0x433   : > { %2475 = vmatpush3.bf16.msra.mxu0 %v2624_v47 }
 0x434   : > { %2476 = vmatprep.subr.bf16.mxu0 %v2772_v4 }
 0x437   : > { %2477 = vmatpush3.bf16.msra.mxu0 %v2625_v48 }
 0x438   : > { %2478 = vmatprep.subr.bf16.mxu0 %v2772_v4 }
 0x43b   : > { %2479 = vmatpush3.bf16.msra.mxu0 %v2626_v49 }
 0x43c   : > { %2504 = vmatprep.subr.bf16.mxu0 %v2627_v50 }
 0x43e   : > { %2481 = vmatmul.mubr.bf16.vlgmr.msra.gmra.mrb[4].mxu0 %v3136_v0 }
 0x43f   : > { %2505 = vmatpush3.bf16.msra.mxu0 %v2627_v50  ;;  %2510 = vmatprep.mubr.msk.bf16.mxu0 %vm1627_vm4, %v2630_v51 }
 0x440   : > { %2506 = vmatprep.subr.bf16.mxu0 %v2628_v52 }
 0x443   : > { %2507 = vmatpush3.bf16.msra.mxu0 %v2628_v52 }
 0x444   : > { %2508 = vmatprep.subr.bf16.mxu0 %v2629_v53 }
 0x447   : > { %2509 = vmatpush3.bf16.msra.mxu0 %v2629_v53 }
 0x448   : > { %2526 = vmatprep.subr.bf16.mxu0 %v2772_v4 }
 0x44a   : > { %2511 = vmatmul.mubr.msk.bf16.vlgmr.msra.gmra.mrb[8].mxu0 %vm1627_vm4, %v2631_v54 }
 0x44b   : > { %2514 = vmatprep.mubr.msk.bf16.mxu0 %vm1627_vm4, %v2632_v55 }
 0x452   : > { %2515 = vmatmul.mubr.msk.bf16.gmra.mrb[12].mxu0 %vm1627_vm4, %v2633_v56 }
 0x453   : > { %2518 = vmatprep.mubr.msk.bf16.mxu0 %vm1627_vm4, %v2636_v57 }
 0x45a   : > { %2519 = vmatmul.mubr.msk.bf16.gmra.mrb[16].mxu0 %vm1627_vm4, %v2637_v58 }
 0x45b   : > { %2522 = vmatprep.mubr.msk.bf16.mxu0 %vm1627_vm4, %v2642_v59 }
 0x462   : > { %2523 = vmatmul.mubr.msk.bf16.gmra.mrb[20].mxu0 %vm1627_vm4, %v2643_v60 }
 0x463   : > { %2542 = vmatprep.mubr.msk.bf16.mxu0 %vm2773_vm2, %v2772_v4 }
 0x4f1   : > { %v1308_v62 = vpop.f32.mrb[0].mxu0 }
 0x4f2   : > { %v2462_v63 = vpop.f32.mrb[1].mxu0 }
 0x4f3   : > { %v1311_v0 = vpop.f32.mrb[2].mxu0 }
 0x4f4   : > { %v1315_v2 = vpack.c.bf16 %v1311_v0, %v1308_v62  ;;  %v2463_v3 = vpop.f32.mrb[3].mxu0 }
 0x4f6   : > { %2501 = vmatmul.mubr.bf16.vlgmr.msra.gmra.mrb[28].mxu1 %v1315_v2 }
 0x511   : > { %v1430_v6 = vpop.f32.mrb[4].mxu0 }
 0x512   : > { %v2482_v9 = vpop.f32.mrb[5].mxu0 }
 0x513   : > { %v1433_v10 = vpop.f32.mrb[6].mxu0 }
 0x514   : > { %v2483_v11 = vpop.f32.mrb[7].mxu0 }
 0x51d   : > { %v2512_v12 = vpop.f32.mrb[8].mxu0 }
 0x51e   : > { %v1686_v13 = vpop.f32.mrb[9].mxu0 }
 0x51f   : > { %v2513_v14 = vpop.f32.mrb[10].mxu0 }
 0x520   : > { %v1750_v15 = vpack.c.bf16 %v2513_v14, %v2512_v12  ;;  %v1689_v16 = vpop.f32.mrb[11].mxu0 }
 0x521   : > { %v1749_v17 = vpack.c.bf16 %v1689_v16, %v1686_v13 }
 0x523   : > { %2527 = vmatpush3.bf16.xpose.msra.mxu0 %v1749_v17 }
 0x524   : > { %2528 = vmatprep.subr.bf16.mxu0 %v2772_v4 }
 0x525   : > { %v2516_v1 = vpop.f32.mrb[12].mxu0 }
 0x526   : > { %v1702_v18 = vpop.f32.mrb[13].mxu0 }
 0x527   : > { %v2517_v19 = vpop.f32.mrb[14].mxu0 }
 0x528   : > { %v1752_v20 = vpack.c.bf16 %v2517_v19, %v2516_v1  ;;  %v1705_v21 = vpop.f32.mrb[15].mxu0 }
 0x529   : > { %v1751_v22 = vpack.c.bf16 %v1705_v21, %v1702_v18 }
 0x52b   : > { %2529 = vmatpush3.bf16.xpose.msra.mxu0 %v1750_v15 }
 0x52c   : > { %2530 = vmatprep.subr.bf16.mxu0 %v2772_v4 }
 0x52d   : > { %v2520_v23 = vpop.f32.mrb[16].mxu0 }
 0x52e   : > { %v1718_v24 = vpop.f32.mrb[17].mxu0 }
 0x52f   : > { %v2521_v8 = vpop.f32.mrb[18].mxu0 }
 0x530   : > { %v1754_v25 = vpack.c.bf16 %v2521_v8, %v2520_v23  ;;  %v1721_v27 = vpop.f32.mrb[19].mxu0 }
 0x531   : > { %v1753_v28 = vpack.c.bf16 %v1721_v27, %v1718_v24 }
 0x533   : > { %2531 = vmatpush3.bf16.xpose.msra.mxu0 %v1751_v22 }
 0x534   : > { %2532 = vmatprep.subr.bf16.mxu0 %v2772_v4 }
 0x535   : > { %v2524_v29 = vpop.f32.mrb[20].mxu0 }
 0x536   : > { %v1734_v30 = vpop.f32.mrb[21].mxu0 }
 0x537   : > { %v2525_v31 = vpop.f32.mrb[22].mxu0 }
 0x538   : > { %v1756_v32 = vpack.c.bf16 %v2525_v31, %v2524_v29  ;;  %v1737_v33 = vpop.f32.mrb[23].mxu0 }
 0x539   : > { %v1755_v34 = vpack.c.bf16 %v1737_v33, %v1734_v30 }
 0x53b   : > { %2533 = vmatpush3.bf16.xpose.msra.mxu0 %v1752_v20 }
 0x53c   : > { %2534 = vmatprep.subr.bf16.mxu0 %v2772_v4 }
 0x543   : > { %2535 = vmatpush3.bf16.xpose.msra.mxu0 %v1753_v28 }
 0x544   : > { %2536 = vmatprep.subr.bf16.mxu0 %v2772_v4 }
 0x54b   : > { %2537 = vmatpush3.bf16.xpose.msra.mxu0 %v1754_v25 }
 0x54c   : > { %2538 = vmatprep.subr.bf16.mxu0 %v2772_v4 }
 0x553   : > { %2539 = vmatpush3.bf16.xpose.msra.mxu0 %v1755_v34 }
 0x554   : > { %2540 = vmatprep.subr.bf16.mxu0 %v2772_v4 }
 0x55b   : > { %2541 = vmatpush3.bf16.xpose.msra.mxu0 %v1756_v32 }
 0x5c9   : > { %v1519_v35 = vpop.f32.mrb[28].mxu1 }
 0x5ca   : > { %v1520_v37 = vadd.f32 %v1519_v35, %v1430_v6  ;;  %v2502_v38 = vpop.f32.mrb[29].mxu1 }
 0x5cb   : > { %v1522_v39 = vpop.f32.mrb[30].mxu1 }
 0x5cc   : > { %v1533_v40 = vadd.f32 %v2189_v36, %v1520_v37  ;;  %v1523_v42 = vadd.f32 %v1522_v39, %v1433_v10  ;;  %v2503_v43 = vpop.f32.mrb[31].mxu1 }
 0x5ce   : > { %v1539_v44 = vadd.f32 %v1538_v41, %v1533_v40  ;;  %v1534_v4 = vadd.f32 %v2189_v36, %v1523_v42 }
 0x5d0   : > { %2688 = vtanh.f32 %v1539_v44  ;;  %v1540_v45 = vadd.f32 %v1538_v41, %v1534_v4 }
 0x5d2   : > { %2690 = vtanh.f32 %v1540_v45 }
 0x5da   : > { %v2689_v46 = vpop.eup %2688 }
 0x5db   : > { %1543 = vst [vmem:[%s658_s4] sm:$0xff] %v2689_v46 }
 0x5dc   : > { %v2691_v47 = vpop.eup %2690 }
 0x5dd   : > { %1544 = vst [vmem:[%s658_s4 + $0x8] sm:$0xff] %v2691_v47  ;;  %v1545_v26 = vpack.c.bf16 %v2691_v47, %v2689_v46 }
 0x5df   : > { %2543 = vmatmul.mubr.bf16.vlgmr.msra.gmra.mrb[24].mxu0 %v1545_v26 }
 0x5e0   : > { %2705 = shalt.err (!%p2702_p5)
}
 0x5e1   : > { %s2706_s24 = scalar_lea.hbm %s3280_s20, 16  ;;  %s2710_s5 = scalar_lea.hbm %s3342_s13, 32 }
 0x5e2   : > { %p2707_p6 = scmp.ne.s32.totalorder %s3280_s20, %s2706_s24  ;;  %p2711_p10 = scmp.lt.u32.totalorder %s3280_s20, %s3342_s13 }
 0x5e3   : > { %p2712_p11 = scmp.lt.u32.totalorder %s2710_s5, %s2706_s24  ;;  %p2714_p13 = scmp.lt.u32.totalorder %s2706_s24, %s3280_s20 }
 0x5e4   : > { %p2708_p7 = pnand %p2707_p6, %p2901_p4 }
 0x5e5   : > { %p2713_p12 = por %p2712_p11, %p2711_p10 }
 0x5e6   : > { %p2709_p9 = pneg %p2708_p7 }
 0x5e7   : > { %p2715_p0 = por %p2714_p13, %p2713_p12 }
 0x5e9   : > { %p2716_p1 = pnand %p2715_p0, %p2709_p9 }
 0x5eb   : > { %2719 = shalt.err (!%p2716_p1)
}
 0x5ec   : > { %2546 = dma.vmem_to_hbm [thread:$0]  (%p2901_p4), %s1867_s25, 16, %s3280_s20, %s1833_s17   ;;  %v1807_v48 = vpop.permute.xlu1 %1806 }
 0x5ed   : > { %v1811_v49 = vrot.slane %v1807_v48, %v2938_v5  ;;  %s671_s27 = scalar_lea.vmem %s3345_s16, %s3028_s3 }
 0x5ef   : > { %vm1812_vm5 = vcmp.lt.s32.totalorder %v3143_v7, %v1811_v49 }
 0x6b2   : > { %v1792_v50 = vpop.f32.mrb[24].mxu0 }
 0x6b3   : > { %v2544_v51 = vpop.f32.mrb[25].mxu0  ;;  %v1815_v53 = vsel %vm1812_vm5, %v1792_v50, -1e+30 }
 0x6b4   : > { %v1795_v52 = vpop.f32.mrb[26].mxu0 }
 0x6b5   : > { %v1816_v54 = vsel %vm1812_vm5, %v1795_v52, -1e+30  ;;  %v2545_v55 = vpop.f32.mrb[27].mxu0 }
 0x6b6   : > { %v2289_v56 = vpack.c.bf16 %v1816_v54, %v1815_v53 }
 0x6b8   : > { %2290 = vst [vmem:[%s671_s27] sm:$0xff] %v2289_v56  }
 0x6b9 PF: > { %p2552_p4 = scmp.ge.s32.totalorder %s2770_s26, 2  ;;  %s1895_s0 = sand.u32 1, %s2750_s21  }
 0x6ba   : > { %s1896_s25 = scalar_lea.sflag [#allocation4], %s1895_s0 }
 0x6bb   : > { %p2549_p2 = pnand %p2552_p4, %p2908_p8 }
 0x6bd   : > { %2745 = dma.done.wait (!%p2549_p2), %s1896_s25, 16  }
 0x6be   : > { %2747 = vsyncadd (!%p2549_p2), %s1896_s25, 4294967280  ;;  %s30_s26 = sadd.s32 1, %s2770_s26   ;;  %s3370_s3 = sld [smem:[#allocation8_spill]] }
 0x6bf   : > { %p27_p3 = scmp.ge.s32.totalorder %s30_s26, 4   ;;  %s3371_s24 = sld [smem:[#allocation6_spill]] }
 0x6c0   : > { %s3372_s25 = sld [smem:[#allocation7_spill]]  ;;  %s3373_s21 = smov %s2754_s22 }
 0x6c1   : > { %s3374_s22 = smov %s2758_s23  ;;  %29 = sbr.rel (!%p27_p3) target bundleno = 12 (0xc), region = 167 }
 0x6c4   : > { %s3375_s23 = smov %s3370_s3 }
 0x6c8   :  { %1927 = vsyncpa [#allocation4], 1 }
 0x6c9   :  { %1929 = vsyncpa [#allocation4 + $0x1], 1 }

</bundles_post_ra>
